<compile_context>
chip_gen: v5e
topology: v5e:2x2
jax: 0.10.0
libtpu: 0.0.40
codegen_flags: <defaults>
</compile_context>

<pallas_src>
import functools
import numpy as np
import jax
import jax.numpy as jnp
from jax.experimental import pallas as pl
from jax.experimental.pallas import tpu as pltpu

# ----------------------------- config ---------------------------------------
B = 2
NZ = 16
COND_DIM = 16
NGF = 8
IMSIZE = 32
CH_SIZE = 3
COND = NZ + COND_DIM                     # cond = cat(noise, c)
CODE_SZ, CODE_CH, MID_CH = 7, 64, 32     # hard-coded in NetG.__init__
CLIP_CH = 768
CLIP_LAYERS = 12
CLIP_HEADS = 12
LEAK = 0.2


def round_up(x, m):
    return (x + m - 1) // m * m


def get_G_in_out_chs(nf, imsize):
    layer_num = int(np.log2(imsize)) - 1
    channel_nums = [nf * min(2 ** idx, 8) for idx in range(layer_num)]
    channel_nums = channel_nums[::-1]
    return list(zip(channel_nums[:-1], channel_nums[1:]))


G_PAIRS = get_G_in_out_chs(NGF, IMSIZE)
G_SIZES = []
_s = 4
for _idx in range(len(G_PAIRS)):
    _s = _s * 2 if _idx < len(G_PAIRS) - 1 else 224   # NetG hard-codes 224 for last block
    G_SIZES.append(_s)

# -------- 224x224 tail: padded-flat layout constants -------------------------
TAIL_HW = G_SIZES[-1]                    # 224
HP = WP = TAIL_HW + 2                    # 226 (zero ring of width 1)
SPAD = HP * WP                           # 51076
TAIL_G = 256                             # front guard >= max tap offset (227), mult of 128
T_CONV = 8704                            # in-kernel lane tile for tap-conv (mult of 128)
NT_CONV = -(-SPAD // T_CONV)             # 6
SX = TAIL_G + NT_CONV * T_CONV + 768     # 53248; tail slack >= max tap offset
TL_TAIL = SX // 4                        # 13312 (mult of 128) modulate tile

_mask2d = np.zeros((HP, WP), np.float32)
_mask2d[1:1 + TAIL_HW, 1:1 + TAIL_HW] = 1.0
_mask_flat = np.zeros((1, SX), np.float32)
_mask_flat[0, TAIL_G:TAIL_G + SPAD] = _mask2d.reshape(-1)
TAIL_MASK = jnp.asarray(_mask_flat)


# ======================= Pallas kernel 1: tiled matmul ========================
def _matmul_bias_kernel(a_ref, b_ref, bias_ref, o_ref, acc_ref, *, act):
    @pl.when(pl.program_id(2) == 0)
    def _():
        acc_ref[...] = jnp.zeros_like(acc_ref)

    acc_ref[...] += jnp.dot(a_ref[...], b_ref[...], preferred_element_type=jnp.float32)

    @pl.when(pl.program_id(2) == pl.num_programs(2) - 1)
    def _():
        r = acc_ref[...] + bias_ref[...]
        if act == "relu":
            r = jnp.maximum(r, 0.0)
        elif act == "leaky":
            r = jnp.where(r > 0, r, LEAK * r)
        o_ref[...] = r.astype(o_ref.dtype)


def _pick_tk(K, cap=2048):
    if K <= cap:
        return K if K % 8 == 0 else round_up(K, 8)
    for d in range(cap, 127, -128):          # largest 128-multiple divisor of K
        if K % d == 0:
            return d
    return 512


def _pick_tn(N):
    if N <= 1024:
        return N                              # full-N block (no output padding)
    for d in range(512, 127, -128):
        if N % d == 0:
            return d
    return 256


@functools.partial(jax.jit, static_argnames=("act",))
def matmul_bias(a, b, bias, act="none"):
    """C = act(A @ B + bias).  A:(M,K) B:(K,N) bias:(N,).  bf16 MXU, f32 accumulate."""
    M, K = a.shape
    _, N = b.shape
    tm = round_up(M, 8) if M <= 512 else 256
    tk = _pick_tk(K)
    tn = _pick_tn(N)
    Mp, Kp, Np = round_up(M, tm), round_up(K, tk), round_up(N, tn)
    a_p = a.astype(jnp.bfloat16)
    b_p = b.astype(jnp.bfloat16)
    if (Mp, Kp) != (M, K):
        a_p = jnp.pad(a_p, ((0, Mp - M), (0, Kp - K)))
    if (Kp, Np) != (K, N):
        b_p = jnp.pad(b_p, ((0, Kp - K), (0, Np - N)))
    bias_p = bias.astype(jnp.float32).reshape(1, N)
    if Np != N:
        bias_p = jnp.pad(bias_p, ((0, 0), (0, Np - N)))
    out = pl.pallas_call(
        functools.partial(_matmul_bias_kernel, act=act),
        out_shape=jax.ShapeDtypeStruct((Mp, Np), jnp.float32),
        grid=(Mp // tm, Np // tn, Kp // tk),
        in_specs=[pl.BlockSpec((tm, tk), lambda i, j, k: (i, k)),
                  pl.BlockSpec((tk, tn), lambda i, j, k: (k, j)),
                  pl.BlockSpec((1, tn), lambda i, j, k: (0, j))],
        out_specs=pl.BlockSpec((tm, tn), lambda i, j, k: (i, j)),
        scratch_shapes=[pltpu.VMEM((tm, tn), jnp.float32)],
        compiler_params=pltpu.CompilerParams(
            dimension_semantics=("parallel", "parallel", "arbitrary")),
    )(a_p, b_p, bias_p)
    if (Mp, Np) != (M, N):
        out = out[:M, :N]
    return out


# ============ Pallas kernel 2: fused per-row affine + LeakyReLU ===============
def _mod_kernel(x_ref, p_ref, m_ref, o_ref, *, two):
    x = x_ref[...].astype(jnp.float32)
    h = p_ref[:, 0:1] * x + p_ref[:, 1:2]
    h = jnp.where(h > 0, h, LEAK * h)
    if two:
        h = p_ref[:, 2:3] * h + p_ref[:, 3:4]
        h = jnp.where(h > 0, h, LEAK * h)
    o_ref[...] = (h * m_ref[...]).astype(o_ref.dtype)


@functools.partial(jax.jit, static_argnames=("two", "tl", "out_dtype"))
def modulate_2d(x2, p, mask, two, tl, out_dtype):
    """x2:(R,L) rows are (n,c); p:(R,4)=[g0,b0,g1,b1]; mask:(1,L) kept-region mask."""
    R, L = x2.shape
    return pl.pallas_call(
        functools.partial(_mod_kernel, two=two),
        out_shape=jax.ShapeDtypeStruct((R, L), out_dtype),
        grid=(L // tl,),
        in_specs=[pl.BlockSpec((R, tl), lambda j: (0, j)),
                  pl.BlockSpec((R, 4), lambda j: (0, 0)),
                  pl.BlockSpec((1, tl), lambda j: (0, j))],
        out_specs=pl.BlockSpec((R, tl), lambda j: (0, j)),
        compiler_params=pltpu.CompilerParams(dimension_semantics=("parallel",)),
    )(x2, p, mask)


def _pack_params(g0, b0, g1, b1):
    cols = [g0.reshape(-1), b0.reshape(-1), g1.reshape(-1), b1.reshape(-1)]
    return jnp.stack(cols, axis=1).astype(jnp.float32)      # (R, 4)


def modulate_nchw(x, g0, b0, g1, b1, two=True):
    """x:(N,C,H,W) f32; per-(n,c) leaky(g0*x+b0) [then leaky(g1*.+b1)]."""
    N, C, H, W = x.shape
    R, L = N * C, H * W
    p = _pack_params(g0, b0, g1, b1)
    mask = jnp.ones((1, L), jnp.float32)
    out = modulate_2d(x.reshape(R, L), p, mask, two=two, tl=L, out_dtype=jnp.float32)
    return out.reshape(N, C, H, W)


def leaky_pallas(x):
    N, C = x.shape[0], x.shape[1]
    ones = jnp.ones((N, C), jnp.float32)
    zeros = jnp.zeros((N, C), jnp.float32)
    return modulate_nchw(x, ones, zeros, ones, zeros, two=False)


def modulate_tail(x, g0, b0, g1, b1):
    """x:(N,C,SX) bf16 on the padded-flat tail layout; ring kept at exactly zero."""
    N, C, S = x.shape
    p = _pack_params(g0, b0, g1, b1)
    out = modulate_2d(x.reshape(N * C, S), p, TAIL_MASK, two=True,
                      tl=TL_TAIL, out_dtype=jnp.bfloat16)
    return out.reshape(N, C, S)


# ===== Pallas kernel 3: tap-accumulating conv on the padded-flat tail layout ==
def _tap_conv_kernel(*refs, offsets, n_tiles, tile, start0, act, has_add):
    if has_add:
        x_ref, w_ref, b_ref, m_ref, a_ref, o_ref = refs
    else:
        x_ref, w_ref, b_ref, m_ref, o_ref = refs
    cout = o_ref.shape[1]
    sx = o_ref.shape[2]
    # keep the guard regions defined (the next conv reads them as zero padding)
    o_ref[0, :, 0:start0] = jnp.zeros((cout, start0), o_ref.dtype)
    tail0 = start0 + n_tiles * tile
    if tail0 < sx:
        o_ref[0, :, tail0:sx] = jnp.zeros((cout, sx - tail0), o_ref.dtype)
    for j in range(n_tiles):
        ts = start0 + j * tile
        acc = jnp.zeros((cout, tile), jnp.float32)
        for t_idx, off in enumerate(offsets):
            xs = x_ref[0, :, ts + off:ts + off + tile]            # (Cin, tile) bf16
            acc = acc + jnp.dot(w_ref[t_idx], xs,
                                preferred_element_type=jnp.float32)
        r = acc + b_ref[...]
        if has_add:
            r = r + a_ref[0, :, ts:ts + tile].astype(jnp.float32)
        if act == "leaky":
            r = jnp.where(r > 0, r, LEAK * r)
        r = r * m_ref[:, ts:ts + tile]                            # zero the ring
        o_ref[0, :, ts:ts + tile] = r.astype(o_ref.dtype)


@functools.partial(jax.jit, static_argnames=("act", "out_dtype"))
def conv_tail(p, x, mask, add=None, act="none", out_dtype=jnp.bfloat16):
    """stride-1 'same' conv (k in {1,3}) on (N, Cin, SX) padded-flat activations."""
    N, cin, sx = x.shape
    w = p['w']
    cout, _, k, _ = w.shape
    half = k // 2
    offsets = tuple((di - half) * WP + (dj - half)
                    for di in range(k) for dj in range(k))
    wt = w.reshape(cout, cin, k * k).transpose(2, 0, 1).astype(jnp.bfloat16)
    bb = p['b'].reshape(cout, 1).astype(jnp.float32)
    has_add = add is not None
    in_specs = [pl.BlockSpec((1, cin, sx), lambda n: (n, 0, 0)),
                pl.BlockSpec((k * k, cout, cin), lambda n: (0, 0, 0)),
                pl.BlockSpec((cout, 1), lambda n: (0, 0)),
                pl.BlockSpec((1, sx), lambda n: (0, 0))]
    args = [x, wt, bb, mask]
    if has_add:
        in_specs.append(pl.BlockSpec((1, cout, sx), lambda n: (n, 0, 0)))
        args.append(add)
    return pl.pallas_call(
        functools.partial(_tap_conv_kernel, offsets=offsets, n_tiles=NT_CONV,
                          tile=T_CONV, start0=TAIL_G, act=act, has_add=has_add),
        out_shape=jax.ShapeDtypeStruct((N, cout, sx), out_dtype),
        grid=(N,),
        in_specs=in_specs,
        out_specs=pl.BlockSpec((1, cout, sx), lambda n: (n, 0, 0)),
        compiler_params=pltpu.CompilerParams(dimension_semantics=("parallel",)),
    )(*args)


# ============================= layer wrappers ================================
def linear(p, x, act="none"):
    return matmul_bias(x, p['w'], p['b'], act=act)        # w stored (fin, fout)


@functools.partial(jax.jit, static_argnames=("pad",))
def conv2d(p, x, pad):
    """small-map stride-1 'same' conv via im2col + Pallas matmul (NCHW in/out)."""
    w, b = p['w'], p['b']
    N, Cin, H, W = x.shape
    Cout, _, k, _ = w.shape
    xp = jnp.pad(x, ((0, 0), (0, 0), (pad, pad), (pad, pad))) if pad > 0 else x
    cols = [xp[:, :, di:di + H, dj:dj + W] for di in range(k) for dj in range(k)]
    col = jnp.stack(cols, axis=2)                                  # (N,Cin,k*k,H,W)
    col = col.transpose(0, 3, 4, 1, 2).reshape(N * H * W, Cin * k * k)
    wm = w.reshape(Cout, Cin * k * k).T
    out = matmul_bias(col.astype(jnp.bfloat16), wm, b)
    return out.reshape(N, H, W, Cout).transpose(0, 3, 1, 2)


def interp_nearest(x, size):
    # matches F.interpolate(mode='nearest'): src = floor(dst * in / out)
    N, C, H, W = x.shape
    if size % H == 0 and size % W == 0:      # integer ratio -> broadcast upsample
        fh, fw = size // H, size // W
        y = jnp.broadcast_to(x[:, :, :, None, :, None], (N, C, H, fh, W, fw))
        return y.reshape(N, C, size, size)
    ri = (jnp.arange(size) * H) // size
    ci = (jnp.arange(size) * W) // size
    return x[:, :, ri[:, None], ci[None, :]]


def upsample_to_tail(x):
    """nearest-upsample NCHW x to 224 and lay it out on the zero-ringed padded-flat grid."""
    N, C, H, W = x.shape
    assert TAIL_HW % H == 0 and TAIL_HW % W == 0
    fh, fw = TAIL_HW // H, TAIL_HW // W
    y = x.astype(jnp.bfloat16)
    y = jnp.broadcast_to(y[:, :, :, None, :, None], (N, C, H, fh, W, fw))
    y = y.reshape(N, C, TAIL_HW, TAIL_HW)
    y = jnp.pad(y, ((0, 0), (0, 0), (1, 1), (1, 1)))               # zero ring
    y = y.reshape(N, C, SPAD)
    return jnp.pad(y, ((0, 0), (0, 0), (TAIL_G, SX - TAIL_G - SPAD)))


def layernorm(x, g, b, eps=1e-5):
    mu = x.mean(axis=-1, keepdims=True)
    var = x.var(axis=-1, keepdims=True)
    return (x - mu) / jnp.sqrt(var + eps) * g + b


# ============================ NetG sub-modules ===============================
def affine_gamma_beta(p, y):
    gamma = linear(p['g2'], linear(p['g1'], y, act='relu'))
    beta = linear(p['b2'], linear(p['b1'], y, act='relu'))
    return gamma, beta


def dfblk(p, x, y):
    g0, b0 = affine_gamma_beta(p['a0'], y)
    g1, b1 = affine_gamma_beta(p['a1'], y)
    return modulate_nchw(x, g0, b0, g1, b1, two=True)


def cadain_leaky(p, x, y):
    # TODO(synk): CAdaIN source is not in the reference file; implemented here as
    # conditional AdaIN (per-(N,C) instance norm + conditionally predicted scale/shift).
    mu = x.mean(axis=(2, 3))
    sigma = jnp.sqrt(x.var(axis=(2, 3)) + 1e-5)
    gamma = linear(p['fc_g'], y)
    beta = linear(p['fc_b'], y)
    g_eff = gamma / sigma
    b_eff = beta - g_eff * mu
    return modulate_nchw(x, g_eff, b_eff, jnp.ones_like(g_eff), jnp.zeros_like(b_eff),
                         two=False)


def dfblk_cadain(p, x, y):
    return cadain_leaky(p['a1'], cadain_leaky(p['a0'], x, y), y)


def sru(x, gn_w, gn_b, group_num=16, gate_threshold=0.5, eps=1e-10):
    # group statistics are tiny (7x7 spatial) -> plain JAX glue
    N, C, H, W = x.shape
    xr = x.reshape(N, group_num, -1)
    mean = xr.mean(axis=2, keepdims=True)
    std = xr.std(axis=2, ddof=1, keepdims=True)          # torch.std is unbiased
    xn = ((xr - mean) / (std + eps)).reshape(N, C, H, W)
    gn_x = xn * gn_w.reshape(1, C, 1, 1) + gn_b.reshape(1, C, 1, 1)
    w_gamma = (gn_w / gn_w.sum()).reshape(1, C, 1, 1)
    rew = jax.nn.sigmoid(gn_x * w_gamma)
    info = (rew >= gate_threshold).astype(x.dtype)
    x1 = info * gn_x
    x2 = (1.0 - info) * gn_x
    h = C // 2
    return jnp.concatenate([x1[:, :h] + x2[:, h:], x1[:, h:] + x2[:, :h]], axis=1)


def m_block(p, x, c):
    h = sru(x, p['gn_w'], p['gn_b'])
    h = leaky_pallas(h)
    r = conv2d(p['conv1'], h, pad=1)
    r = dfblk_cadain(p['fuse1'], r, c)
    r = conv2d(p['conv2'], r, pad=1)
    r = dfblk_cadain(p['fuse2'], r, c)
    sc = conv2d(p['c_sc'], x, pad=0) if 'c_sc' in p else x
    return sc + r


def g_block(p, h, y, imsize):
    """small-resolution G_Block (NCHW path)."""
    h = interp_nearest(h, imsize)
    sc = conv2d(p['c_sc'], h, pad=0) if 'c_sc' in p else h
    r = dfblk(p['fuse1'], h, y)
    r = conv2d(p['c1'], r, pad=1)
    r = dfblk(p['fuse2'], r, y)
    r = conv2d(p['c2'], r, pad=1)
    return sc + r


@jax.jit
def tail_forward(gp, rgb_p, x, y):
    """last G_Block (224x224) + to_rgb, fused on the padded-flat lane-dense layout."""
    g0a, b0a = affine_gamma_beta(gp['fuse1']['a0'], y)
    g1a, b1a = affine_gamma_beta(gp['fuse1']['a1'], y)
    g0b, b0b = affine_gamma_beta(gp['fuse2']['a0'], y)
    g1b, b1b = affine_gamma_beta(gp['fuse2']['a1'], y)
    h = upsample_to_tail(x)                                      # (N, 16, SX) bf16
    sc = conv_tail(gp['c_sc'], h, TAIL_MASK)                     # 1x1 shortcut
    r = modulate_tail(h, g0a, b0a, g1a, b1a)
    r = conv_tail(gp['c1'], r, TAIL_MASK)
    r = modulate_tail(r, g0b, b0b, g1b, b1b)
    # sc + r and the to_rgb LeakyReLU fused into the c2 epilogue
    r = conv_tail(gp['c2'], r, TAIL_MASK, add=sc, act="leaky")
    o = conv_tail(rgb_p, r, TAIL_MASK, out_dtype=jnp.float32)    # to_rgb conv
    N = o.shape[0]
    o = o[:, :, TAIL_G:TAIL_G + SPAD].reshape(N, CH_SIZE, HP, WP)
    return o[:, :, 1:1 + TAIL_HW, 1:1 + TAIL_HW]


# ----------------------------- CLIP mapper -----------------------------------
def mha(p, x):
    L, Bm, E = x.shape
    hd = E // CLIP_HEADS
    qkv = matmul_bias(x.reshape(L * Bm, E), p['in_proj']['w'], p['in_proj']['b'])
    qkv = qkv.reshape(L, Bm, 3, CLIP_HEADS, hd)
    q = qkv[:, :, 0].transpose(1, 2, 0, 3)
    k = qkv[:, :, 1].transpose(1, 2, 0, 3)
    v = qkv[:, :, 2].transpose(1, 2, 0, 3)
    att = jnp.einsum('bhld,bhmd->bhlm', q, k) / np.sqrt(hd)   # seq ~51: tiny, JAX glue
    att = jax.nn.softmax(att, axis=-1)
    ctx = jnp.einsum('bhlm,bhmd->bhld', att, v)
    ctx = ctx.transpose(2, 0, 1, 3).reshape(L * Bm, E)
    out = matmul_bias(ctx, p['out_proj']['w'], p['out_proj']['b'])
    return out.reshape(L, Bm, E)


@jax.jit
def resblock(p, x):
    x = x + mha(p, layernorm(x, p['ln1_g'], p['ln1_b']))
    h = layernorm(x, p['ln2_g'], p['ln2_b'])
    L, Bm, E = h.shape
    h2 = matmul_bias(h.reshape(L * Bm, E), p['fc']['w'], p['fc']['b'])
    h2 = h2 * jax.nn.sigmoid(1.702 * h2)                      # QuickGELU
    h2 = matmul_bias(h2, p['proj']['w'], p['proj']['b']).reshape(L, Bm, E)
    return x + h2


def clip_mapper(p, img, prompts):
    # TODO(synk): the pretrained frozen CLIP weights are external; a ViT-B-style
    # transformer with deterministic synthetic weights reproduces CLIP_Mapper dataflow.
    Bm, C, G, _ = img.shape
    x = img.reshape(Bm, C, G * G).transpose(0, 2, 1)          # (B, 49, 768)
    cls = jnp.broadcast_to(p['class_emb'], (Bm, 1, C))
    x = jnp.concatenate([cls, x], axis=1) + p['pos_emb'][None]
    x = layernorm(x, p['ln_pre_g'], p['ln_pre_b'])
    x = x.transpose(1, 0, 2)                                  # (50, B, 768)
    selected = (1, 2, 3, 4, 5, 6, 7, 8)
    prompt_idx = 0
    for i in range(CLIP_LAYERS):
        blk = p['blocks'][i]
        if i in selected:
            pr = prompts[:, prompt_idx, :][None]              # (1, B, 768)
            prompt_idx += 1
            x = jnp.concatenate([x, pr], axis=0)
            x = resblock(blk, x)
            x = x[:-1]
        else:
            x = resblock(blk, x)
    x = x.transpose(1, 0, 2)[:, 1:, :]
    return x.transpose(0, 2, 1).reshape(Bm, CLIP_CH, G, G)


def clip_adapter(p, out, c):
    prompts = linear(p['fc_prompt'], c).reshape(c.shape[0], -1, CLIP_CH)
    out = m_block(p['fb1'], out, c)
    out = m_block(p['fb2'], out, c)
    # TODO(synk): DilateBlock(64, 4) is not defined in the reference source; identity here.
    out = m_block(p['fb3'], out, c)
    out = m_block(p['fb4'], out, c)
    fuse_feat = conv2d(p['conv_fuse'], out, pad=2)
    map_feat = clip_mapper(p['clip'], fuse_feat, prompts)
    return conv2d(p['conv'], fuse_feat + 0.1 * map_feat, pad=2)


def netg_forward(params, noise, c):
    # mixed_precision autocast path not modelled: bf16 matmul/conv operands with
    # f32 accumulation (eval-style forward).
    cond = jnp.concatenate([noise, c], axis=1)
    out = linear(params['fc_code'], noise).reshape(noise.shape[0], CODE_CH, CODE_SZ, CODE_SZ)
    out = clip_adapter(params['mapping'], out, cond)
    for gp, size in zip(params['gblocks'][:-1], G_SIZES[:-1]):
        out = g_block(gp, out, cond, size)
    out = tail_forward(params['gblocks'][-1], params['to_rgb'], out, cond)
    return out


# ========================= deterministic parameter init ======================
def init_linear(key, fin, fout):
    kw, kb = jax.random.split(key)
    bound = 1.0 / np.sqrt(fin)
    # stored pre-transposed (fin, fout) and in bf16: no runtime transpose / cast traffic
    w = jax.random.uniform(kw, (fin, fout), jnp.float32, -bound, bound).astype(jnp.bfloat16)
    b = jax.random.uniform(kb, (fout,), jnp.float32, -bound, bound)
    return {'w': w, 'b': b}


def init_conv(key, cin, cout, k):
    kw, kb = jax.random.split(key)
    bound = 1.0 / np.sqrt(cin * k * k)
    w = jax.random.uniform(kw, (cout, cin, k, k), jnp.float32, -bound, bound).astype(jnp.bfloat16)
    b = jax.random.uniform(kb, (cout,), jnp.float32, -bound, bound)
    return {'w': w, 'b': b}


def init_affine(key, cond, nf):
    # matches Affine._initialize: linear2 weights zero, gamma bias one, beta bias zero
    k1, k2 = jax.random.split(key)
    return {'g1': init_linear(k1, cond, nf),
            'g2': {'w': jnp.zeros((nf, nf), jnp.bfloat16), 'b': jnp.ones((nf,), jnp.float32)},
            'b1': init_linear(k2, cond, nf),
            'b2': {'w': jnp.zeros((nf, nf), jnp.bfloat16), 'b': jnp.zeros((nf,), jnp.float32)}}


def init_cadain(key, cond, ch):
    k1, k2 = jax.random.split(key)
    return {'fc_g': init_linear(k1, cond, ch), 'fc_b': init_linear(k2, cond, ch)}


def init_mblock(key, in_ch, mid_ch, out_ch, cond):
    ks = jax.random.split(key, 8)
    p = {'conv1': init_conv(ks[0], in_ch, mid_ch, 3),
         'conv2': init_conv(ks[1], mid_ch, out_ch, 3),
         'fuse1': {'a0': init_cadain(ks[2], cond, mid_ch), 'a1': init_cadain(ks[3], cond, mid_ch)},
         'fuse2': {'a0': init_cadain(ks[4], cond, out_ch), 'a1': init_cadain(ks[5], cond, out_ch)},
         'gn_w': 1.0 + 0.1 * jax.random.normal(ks[6], (in_ch,), jnp.float32),
         'gn_b': jnp.zeros((in_ch,), jnp.float32)}
    if in_ch != out_ch:
        p['c_sc'] = init_conv(ks[7], in_ch, out_ch, 1)
    return p


def init_gblock(key, cond, in_ch, out_ch):
    ks = jax.random.split(key, 7)
    p = {'c1': init_conv(ks[0], in_ch, out_ch, 3),
         'c2': init_conv(ks[1], out_ch, out_ch, 3),
         'fuse1': {'a0': init_affine(ks[2], cond, in_ch), 'a1': init_affine(ks[3], cond, in_ch)},
         'fuse2': {'a0': init_affine(ks[4], cond, out_ch), 'a1': init_affine(ks[5], cond, out_ch)}}
    if in_ch != out_ch:
        p['c_sc'] = init_conv(ks[6], in_ch, out_ch, 1)
    return p


def init_clip(key):
    ks = jax.random.split(key, CLIP_LAYERS + 2)
    p = {'class_emb': 0.02 * jax.random.normal(ks[0], (CLIP_CH,), jnp.float32),
         'pos_emb': 0.01 * jax.random.normal(ks[1], (CODE_SZ * CODE_SZ + 1, CLIP_CH), jnp.float32),
         'ln_pre_g': jnp.ones((CLIP_CH,), jnp.float32),
         'ln_pre_b': jnp.zeros((CLIP_CH,), jnp.float32),
         'blocks': []}
    for i in range(CLIP_LAYERS):
        kk = jax.random.split(ks[2 + i], 4)
        p['blocks'].append({
            'ln1_g': jnp.ones((CLIP_CH,), jnp.float32), 'ln1_b': jnp.zeros((CLIP_CH,), jnp.float32),
            'in_proj': init_linear(kk[0], CLIP_CH, 3 * CLIP_CH),
            'out_proj': init_linear(kk[1], CLIP_CH, CLIP_CH),
            'ln2_g': jnp.ones((CLIP_CH,), jnp.float32), 'ln2_b': jnp.zeros((CLIP_CH,), jnp.float32),
            'fc': init_linear(kk[2], CLIP_CH, 4 * CLIP_CH),
            'proj': init_linear(kk[3], 4 * CLIP_CH, CLIP_CH)})
    return p


def init_netg(key):
    ks = jax.random.split(key, 12)
    g_ch = NGF * 8
    mapping = {'fc_prompt': init_linear(ks[0], COND, CLIP_CH * 8),
               'fb1': init_mblock(ks[1], CODE_CH, MID_CH, CODE_CH, COND),
               'fb2': init_mblock(ks[2], CODE_CH, MID_CH, CODE_CH, COND),
               'fb3': init_mblock(ks[3], CODE_CH, MID_CH, CODE_CH, COND),
               'fb4': init_mblock(ks[4], CODE_CH, MID_CH, CODE_CH, COND),
               'conv_fuse': init_conv(ks[5], CODE_CH, CLIP_CH, 5),
               'conv': init_conv(ks[6], CLIP_CH, g_ch, 5),
               'clip': init_clip(ks[7])}
    gblocks = []
    gk = jax.random.split(ks[8], len(G_PAIRS))
    for kgi, (ic, oc) in zip(gk, G_PAIRS):
        gblocks.append(init_gblock(kgi, COND, ic, oc))
    return {'fc_code': init_linear(ks[9], NZ, CODE_SZ * CODE_SZ * CODE_CH),
            'mapping': mapping,
            'gblocks': gblocks,
            'to_rgb': init_conv(ks[10], G_PAIRS[-1][1], CH_SIZE, 3)}


# ================================== main =====================================
if __name__ == "__main__":
    key = jax.random.PRNGKey(0)
    kn, kc = jax.random.split(key)
    noise = jax.random.normal(kn, (B, NZ), jnp.float32)
    c = jax.random.normal(kc, (B, COND_DIM), jnp.float32)

    params = init_netg(jax.random.PRNGKey(42))

    out = netg_forward(params, noise, c)
    out = jax.block_until_ready(out)

    assert out.shape == (B, CH_SIZE, 224, 224), out.shape
    assert bool(jnp.all(jnp.isfinite(out)))
    print("KERNEL_OK")
</pallas_src>

<mosaic_0001>
module attributes {stable_mosaic.version = 11 : i64} {
  func.func @_matmul_bias_kernel(%arg0: i32, %arg1: i32, %arg2: i32, %arg3: memref<8x16xbf16, #tpu.memory_space<vmem>>, %arg4: memref<16x256xbf16, #tpu.memory_space<vmem>>, %arg5: memref<1x256xf32, #tpu.memory_space<vmem>>, %arg6: memref<8x256xf32, #tpu.memory_space<vmem>>, %arg7: memref<8x256xf32, #tpu.memory_space<vmem>>) attributes {dimension_semantics = [#tpu.dimension_semantics<parallel>, #tpu.dimension_semantics<parallel>, #tpu.dimension_semantics<arbitrary>], iteration_bounds = array<i64: 1, 13, 1>, scalar_prefetch = 0 : i64, scratch_operands = 1 : i64, tpu.core_type = #tpu.core_type<tc>, window_params = [{transform_indices = @transform_0, window_bounds = array<i64: 8, 16>}, {transform_indices = @transform_1, window_bounds = array<i64: 16, 256>}, {transform_indices = @transform_2, window_bounds = array<i64: 1, 256>}, {transform_indices = @transform_3, window_bounds = array<i64: 8, 256>}]} {
    %c0_i32 = arith.constant 0 : i32
    %0 = arith.cmpi eq, %arg2, %c0_i32 : i32
    %1 = arith.extui %0 : i1 to i32
    %c0_i32_0 = arith.constant 0 : i32
    %2 = arith.cmpi ne, %1, %c0_i32_0 : i32
    scf.if %2 {
      %cst_10 = arith.constant 0.000000e+00 : f32
      %12 = vector.broadcast %cst_10 : f32 to vector<8x256xf32>
      %c0_11 = arith.constant 0 : index
      %c0_12 = arith.constant 0 : index
      %13 = vector.load %arg7[%c0_11, %c0_12] : memref<8x256xf32, #tpu.memory_space<vmem>>, vector<8x256xf32>
      tpu.vector_store %arg7[%c0_11, %c0_12], %12 {strides = array<i32>} : memref<8x256xf32, #tpu.memory_space<vmem>>, vector<8x256xf32>,
    } else {
    }
    %c0 = arith.constant 0 : index
    %c0_1 = arith.constant 0 : index
    %3 = vector.load %arg7[%c0, %c0_1] : memref<8x256xf32, #tpu.memory_space<vmem>>, vector<8x256xf32>
    %c0_2 = arith.constant 0 : index
    %c0_3 = arith.constant 0 : index
    %4 = vector.load %arg3[%c0_2, %c0_3] : memref<8x16xbf16, #tpu.memory_space<vmem>>, vector<8x16xbf16>
    %c0_4 = arith.constant 0 : index
    %c0_5 = arith.constant 0 : index
    %5 = vector.load %arg4[%c0_4, %c0_5] : memref<16x256xbf16, #tpu.memory_space<vmem>>, vector<16x256xbf16>
    %cst = arith.constant dense<0.000000e+00> : vector<8x256xf32>
    %6 = tpu.matmul %4, %5, %cst {dimension_numbers = #tpu.dot_dimension_numbers<[1], [0], [0], [1], [0, 0, 1, 1], [], []>} : vector<8x16xbf16>, vector<16x256xbf16>, vector<8x256xf32> -> vector<8x256xf32>
    %7 = arith.addf %3, %6 : vector<8x256xf32>
    %c0_6 = arith.constant 0 : index
    %c0_7 = arith.constant 0 : index
    %8 = vector.load %arg7[%c0_6, %c0_7] : memref<8x256xf32, #tpu.memory_space<vmem>>, vector<8x256xf32>
    tpu.vector_store %arg7[%c0_6, %c0_7], %7 {strides = array<i32>} : memref<8x256xf32, #tpu.memory_space<vmem>>, vector<8x256xf32>,
    %c0_i32_8 = arith.constant 0 : i32
    %9 = arith.cmpi eq, %arg2, %c0_i32_8 : i32
    %10 = arith.extui %9 : i1 to i32
    %c0_i32_9 = arith.constant 0 : i32
    %11 = arith.cmpi ne, %10, %c0_i32_9 : i32
    scf.if %11 {
      %c0_10 = arith.constant 0 : index
      %c0_11 = arith.constant 0 : index
      %12 = vector.load %arg7[%c0_10, %c0_11] : memref<8x256xf32, #tpu.memory_space<vmem>>, vector<8x256xf32>
      %c0_12 = arith.constant 0 : index
      %c0_13 = arith.constant 0 : index
      %13 = vector.load %arg5[%c0_12, %c0_13] : memref<1x256xf32, #tpu.memory_space<vmem>>, vector<1x256xf32>
      %14 = vector.broadcast %13 : vector<1x256xf32> to vector<8x256xf32>
      %15 = arith.addf %12, %14 : vector<8x256xf32>
      %c0_14 = arith.constant 0 : index
      %c0_15 = arith.constant 0 : index
      %16 = vector.load %arg6[%c0_14, %c0_15] : memref<8x256xf32, #tpu.memory_space<vmem>>, vector<8x256xf32>
      tpu.vector_store %arg6[%c0_14, %c0_15], %15 {strides = array<i32>} : memref<8x256xf32, #tpu.memory_space<vmem>>, vector<8x256xf32>,
    } else {
    }
    return
  }
  func.func @transform_0(%arg0: i32, %arg1: i32, %arg2: i32) -> (i32, i32) {
    %c0_i32 = arith.constant 0 : i32
    return %arg0, %arg2 : i32, i32
  }
  func.func @transform_1(%arg0: i32, %arg1: i32, %arg2: i32) -> (i32, i32) {
    %c0_i32 = arith.constant 0 : i32
    return %arg2, %arg1 : i32, i32
  }
  func.func @transform_2(%arg0: i32, %arg1: i32, %arg2: i32) -> (i32, i32) {
    %c0_i32 = arith.constant 0 : i32
    %c0_i32_0 = arith.constant 0 : i32
    return %c0_i32, %arg1 : i32, i32
  }
  func.func @transform_3(%arg0: i32, %arg1: i32, %arg2: i32) -> (i32, i32) {
    %c0_i32 = arith.constant 0 : i32
    return %arg0, %arg1 : i32, i32
  }
}

</mosaic_0001>

<bundles_post_ra>
// kernel: matmul_bias.1
= control target key start
LH: loop header
LB: loop body
LE: loop exit
PB: predicated region body
PF: predicated region fallthrough
CT: control target
= control target key end

     0   :  { %s614_s12 = smov 0   ;;  %s616_s13 = smov 0   ;;  %s685_s0 = inlined_call_operand.vmem [shape: bf16[8,16], index: 0, kind: input, shape index: {}]   ;;  %s686_s1 = inlined_call_operand.vmem [shape: bf16[16,3328], index: 1, kind: input, shape index: {}]   ;;  %s687_s2 = inlined_call_operand.vmem [shape: f32[1,3328], index: 2, kind: input, shape index: {}]   ;;  %s688_s3 = inlined_call_operand.vmem [shape: f32[8,3328], index: 3, kind: output, shape index: {}]  }
   0x1   :  { %s618_s14 = smov 0   ;;  %s620_s15 = smov 0  }
   0x2   :  { %s622_s16 = smov 0  }
   0x3 LB: > { %s28_s17 = sadd.s32 1, %s588_s15  ;;  %p76_p1 = scmp.ne.s32.totalorder %s580_s13, %s576_s12  ;;  %s592_s16 = sphi %s622_s16, %s13_s16   ;;  %s588_s15 = sphi %s620_s15, %s692_s15   ;;  %s584_s14 = sphi %s618_s14, %s691_s14   ;;  %s580_s13 = sphi %s616_s13, %s690_s13   ;;  %s576_s12 = sphi %s614_s12, %s689_s12  }
   0x4   : > { %p30_p0 = scmp.ge.s32.totalorder %s28_s17, 13  ;;  %p77_p2 = scmp.eq.s32.totalorder %s592_s16, 0 }
   0x5   : > { %s69_s19 = sadd.s32 1, %s580_s13  ;;  %p490_p5 = scmp.ge.s32.totalorder %s592_s16, 13 }
   0x6   : > { %s694_s17 = smov (%p30_p0, %s28_s17), 0  ;;  %p78_p3 = por %p77_p2, %p76_p1 }
   0x7   : > { %s65_s18 = ssub.s32 %s588_s15, %s694_s17  ;;  %166 = sbr.rel (%p490_p5) target bundleno = 18 (0x12), region = 20 }
   0x8   : > { %p67_p4 = scmp.eq.s32.totalorder %s65_s18, 0 }
   0xa   : > { %s649_s20 = scalar_select %p67_p4, %s580_s13, %s69_s19  }
   0xc   : > { %169 = sbr.rel (!%p78_p3) target bundleno = 18 (0x12), region = 24  ;;  %s171_s21 = sand.u32 (%p78_p3), 1, %s580_s13  }
   0xd   : > { %s511_s22 = sshll.u32 (%p78_p3), %s588_s15, 3  ;;  %s491_s23 = sshll.u32 (%p78_p3), %s171_s21, 4 }
   0xe   : > { %s179_s26 = scalar_lea.vmem (%p78_p3), %s686_s1, %s511_s22  ;;  %s173_s27 = scalar_lea.vmem (%p78_p3), [#allocation3], %s491_s23 }
   0xf   : > { %v210_v0 = vld [vmem:[%s179_s26] sm:$0xff] (%p78_p3)  ;;  %v212_v1 = vld [vmem:[%s179_s26 + $0x68] sm:$0xff] (%p78_p3) }
  0x10   : > { %211 = vst [vmem:[%s173_s27] sm:$0xff] (%p78_p3), %v210_v0 }
  0x11   : > { %213 = vst [vmem:[%s173_s27 + $0x8] sm:$0xff] %v212_v1 }
  0x12 PF: > { %p494_p6 = scmp.ge.s32.totalorder %s592_s16, 1  ;;  %p226_p7 = scmp.lt.s32.totalorder %s592_s16, 14 }
  0x14   : > { %p227_p8 = pnand %p494_p6, %p226_p7 }
  0x15   : > { %s233_s28 = sand.u32 (!%p227_p8), 1, %s576_s12   ;;  %s496_s6 = sshll.u32 (!%p227_p8), %s584_s14, 1 }
  0x16   : > { %230 = sbr.rel (%p227_p8) target bundleno = 168 (0xa8), region = 66  ;;  %s495_s29 = sshll.u32 (!%p227_p8), %s233_s28, 4 }
  0x17   : > { %s235_s30 = scalar_lea.vmem (!%p227_p8), [#allocation3], %s495_s29  ;;  %p281_p9 = scmp.lt.s32.totalorder (!%p227_p8), %s496_s6, 25 }
  0x1b   : > { %v501_v2 = vld [vmem:[%s235_s30] sm:$0xf]  ;;  %v513_v3 = vld [vmem:[%s235_s30 + $0x4] sm:$0xf0]  ;;  %v512_v4 = vld [vmem:[%s235_s30 + $0x4] sm:$0xf] }
  0x1c   : > { %v502_v5 = vor.u32 %v513_v3, %v501_v2  ;;  %v503_v6 = vld [vmem:[%s235_s30 + $0x8] sm:$0xf0]  ;;  %v304_v8 = vld [vmem:[%s685_s0] sm:$0xf]  ;;  %vm317_vm0 = vcmask 130048   ;;  %s696_s6 = smov (!%p281_p9, %s496_s6), 25 }
  0x1d   : > { %v506_v7 = vor.u32 %v512_v4, %v503_v6  ;;  %s283_s9 = scalar_lea.vmem %s687_s2, %s696_s6  ;;  %s498_s10 = sshll.u32 %s696_s6, 3 }
  0x1e   : > { %328 = vmatpush.bf16.msra.mxu0 %v502_v5  ;;  %v356_v9 = vld [vmem:[%s283_s9] sm:$0x3]  ;;  %s293_s18 = scalar_lea.vmem %s688_s3, %s498_s10 }
  0x1f   : > { %341 = vmatpush.bf16.msra.mxu1 %v506_v7  ;;  %v358_v10 = vperm.slane %v356_v9, 0  ;;  %v359_v11 = vperm.slane %v356_v9, 1 }
  0x21   : > { %507 = vmatmul.msk.bf16.vlgmr.msra.gmra.mxu0 %vm317_vm0, %v304_v8 }
  0x22   : > { %508 = vmatmul.msk.bf16.vlgmr.msra.gmra.mxu1 %vm317_vm0, %v304_v8 }
  0x9e   : > { %v330_v12 = vpop.f32.mrf.mxu0 }
  0x9f   : > { %v362_v13 = vadd.f32 %v358_v10, %v330_v12  ;;  %v343_v14 = vpop.f32.mrf.mxu1 }
  0xa0   : > { %v363_v15 = vadd.f32 %v359_v11, %v343_v14 }
  0xa1   : > { %364 = vst [vmem:[%s293_s18] sm:$0xff] %v362_v13 }
  0xa2   : > { %365 = vst [vmem:[%s293_s18 + $0x8] sm:$0xff] %v363_v15 }
  0xa6   : > { %v332_v16 = vpop.f32.mrf.mxu0 }
  0xa7   : > { %v345_v17 = vpop.f32.mrf.mxu1 }
  0xa8 PF: > { %s13_s16 = sadd.s32 1, %s592_s16   ;;  %s689_s12 = smov %s580_s13 }
  0xa9   : > { %p10_p10 = scmp.ge.s32.totalorder %s13_s16, 15   ;;  %s690_s13 = smov %s649_s20 }
  0xaa   : > { %s691_s14 = smov %s588_s15  ;;  %s692_s15 = smov %s694_s17 }
  0xab   :  { %12 = sbr.rel (!%p10_p10) target bundleno = 3 (0x3), region = 119 }

</bundles_post_ra>
